<compile_context>
chip_gen: v5e
topology: v5e:2x2
jax: 0.10.0
libtpu: 0.0.40
codegen_flags: <defaults>
</compile_context>

<pallas_src>
import functools

import jax
import jax.numpy as jnp
from jax.experimental import pallas as pl
from jax.experimental.pallas import tpu as pltpu

_LANE = 128


def channel_attention_kernel(x_ref, w1_ref, w2_ref, o_ref, sum_acc, max_acc,
                             *, s_real, s_tile, needs_mask):
    # x_ref: (B_TILE, C, S_TILE); w1_ref: (2C, 2Cr) block-diag; w2_ref: (2Cr, C)
    # o_ref: (B_TILE, C); sum_acc / max_acc: (B_TILE, C, 128) f32 scratch.
    s_idx = pl.program_id(1)

    @pl.when(s_idx == 0)
    def _init():
        sum_acc[...] = jnp.zeros_like(sum_acc)
        max_acc[...] = jnp.full_like(max_acc, -jnp.inf)

    x = x_ref[...].astype(jnp.float32)              # (B_TILE, C, S_TILE)
    n_chunks = s_tile // _LANE
    base = s_idx * s_tile

    # Elementwise (VPU) accumulation over aligned 128-lane chunks; the single
    # cross-lane (XLU) reduce is deferred to the finalize step.
    local_sum = None
    local_max = None
    for c in range(n_chunks):                       # static unroll
        chunk = x[:, :, c * _LANE:(c + 1) * _LANE]  # (B_TILE, C, 128), vreg-aligned
        if needs_mask:
            pos = base + c * _LANE + jax.lax.broadcasted_iota(
                jnp.int32, chunk.shape, 2)
            valid = pos < s_real
            chunk_sum = jnp.where(valid, chunk, 0.0)
            chunk_max = jnp.where(valid, chunk, -jnp.inf)
        else:
            chunk_sum = chunk
            chunk_max = chunk
        if local_sum is None:
            local_sum, local_max = chunk_sum, chunk_max
        else:
            local_sum = local_sum + chunk_sum
            local_max = jnp.maximum(local_max, chunk_max)

    sum_acc[...] += local_sum
    max_acc[...] = jnp.maximum(max_acc[...], local_max)

    @pl.when(s_idx == pl.num_programs(1) - 1)
    def _finalize():
        avg = jnp.sum(sum_acc[...], axis=-1) * (1.0 / s_real)      # (B_TILE, C)
        mx = jnp.max(max_acc[...], axis=-1)                        # (B_TILE, C)
        pooled = jnp.concatenate([avg, mx], axis=-1)               # (B_TILE, 2C)
        h = jnp.maximum(
            jnp.dot(pooled, w1_ref[...].astype(jnp.float32),
                    preferred_element_type=jnp.float32), 0.0)      # (B_TILE, 2Cr)
        out = jnp.dot(h, w2_ref[...].astype(jnp.float32),
                      preferred_element_type=jnp.float32)          # (B_TILE, C)
        o_ref[...] = jax.nn.sigmoid(out).astype(o_ref.dtype)


def channel_attention(x_nchw, w1a, w2a, w1m, w2m, *, s_tile=1024, b_tile=None):
    """x_nchw: (B, C, H, W). Weights stored as (C_in, C_out). Returns (B, C, 1, 1)."""
    B, C, H, W = x_nchw.shape
    Cr = w1a.shape[1]
    S = H * W
    x = x_nchw.reshape(B, C, S)

    # Batch tile: multiple of 8 when possible (sublane alignment), else full B.
    if b_tile is None or (B % b_tile) != 0:
        b_tile = 8 if (B % 8 == 0) else B
    n_b = B // b_tile

    # Spatial tile: multiple of 128 lanes, clamped to the (padded) spatial size.
    s_tile = max(_LANE, min((s_tile // _LANE) * _LANE, pl.cdiv(S, _LANE) * _LANE))
    S_pad = pl.cdiv(S, s_tile) * s_tile
    needs_mask = S_pad != S
    if needs_mask:
        # Zero padding; padded lanes are masked to 0 (sum) / -inf (max) in-kernel.
        x = jnp.pad(x, ((0, 0), (0, 0), (0, S_pad - S)))
    n_s = S_pad // s_tile

    # Fused FC weights:
    #   [avg | max] @ block_diag(w1a, w1m) = [h_a | h_m]
    #   [h_a | h_m] @ [w2a ; w2m]          = avg_out + max_out
    w1_blk = jnp.zeros((2 * C, 2 * Cr), dtype=jnp.float32)
    w1_blk = w1_blk.at[:C, :Cr].set(w1a).at[C:, Cr:].set(w1m)
    w2_stack = jnp.concatenate([w2a, w2m], axis=0).astype(jnp.float32)

    kernel = functools.partial(channel_attention_kernel, s_real=S,
                               s_tile=s_tile, needs_mask=needs_mask)

    out = pl.pallas_call(
        kernel,
        out_shape=jax.ShapeDtypeStruct((B, C), x_nchw.dtype),
        grid=(n_b, n_s),
        in_specs=[
            pl.BlockSpec((b_tile, C, s_tile), lambda b, s: (b, 0, s)),
            pl.BlockSpec(w1_blk.shape, lambda b, s: (0, 0)),   # resident weights
            pl.BlockSpec(w2_stack.shape, lambda b, s: (0, 0)),
        ],
        out_specs=pl.BlockSpec((b_tile, C), lambda b, s: (b, 0)),
        scratch_shapes=[
            pltpu.VMEM((b_tile, C, _LANE), jnp.float32),   # running sum
            pltpu.VMEM((b_tile, C, _LANE), jnp.float32),   # running max
        ],
        compiler_params=pltpu.CompilerParams(
            dimension_semantics=("parallel", "arbitrary"),
            vmem_limit_bytes=48 * 1024 * 1024,   # > default scoped, < v7x physical
        ),
    )(x, w1_blk, w2_stack)

    return out.reshape(B, C, 1, 1)


def _reference(x_nchw, w1a, w2a, w1m, w2m):
    # Pure-JAX reference of the PyTorch forward, for correctness checking.
    avg = jnp.mean(x_nchw.astype(jnp.float32), axis=(2, 3))       # (B, C)
    mx = jnp.max(x_nchw.astype(jnp.float32), axis=(2, 3))         # (B, C)
    avg_out = jnp.maximum(avg @ w1a, 0.0) @ w2a
    max_out = jnp.maximum(mx @ w1m, 0.0) @ w2m
    return jax.nn.sigmoid(avg_out + max_out).reshape(*avg.shape, 1, 1)


if __name__ == "__main__":
    # Module config: in_channels=32, ratio=16 -> hidden = 2
    B, C, ratio = 2, 32, 16
    Cr = C // ratio

    key = jax.random.PRNGKey(0)
    kx, k1, k2, k3, k4, kx2 = jax.random.split(key, 6)

    # Conv2d 1x1 (bias=False) weights stored as (C_in, C_out), i.e. transpose of
    # PyTorch's squeezed (C_out, C_in, 1, 1) weight.
    w1a = jax.random.normal(k1, (C, Cr), dtype=jnp.float32) * 0.1   # fc  conv1
    w2a = jax.random.normal(k2, (Cr, C), dtype=jnp.float32) * 0.1   # fc  conv2
    w1m = jax.random.normal(k3, (C, Cr), dtype=jnp.float32) * 0.1   # fc2 conv1
    w2m = jax.random.normal(k4, (Cr, C), dtype=jnp.float32) * 0.1   # fc2 conv2

    # Case 1: S divisible by the spatial tile; s_tile=128 forces a 2-step
    # spatial reduction to exercise init / accumulate / finalize.
    x1 = jax.random.normal(kx, (B, C, 16, 16), dtype=jnp.float32)
    out1 = channel_attention(x1, w1a, w2a, w1m, w2m, s_tile=128)
    jax.block_until_ready(out1)
    ref1 = _reference(x1, w1a, w2a, w1m, w2m)
    assert out1.shape == (B, C, 1, 1)
    assert jnp.allclose(out1, ref1, atol=2e-5, rtol=1e-5)

    # Case 2: ragged spatial size (S=169 -> padded to 256) exercises the mask path.
    x2 = jax.random.normal(kx2, (B, C, 13, 13), dtype=jnp.float32)
    out2 = channel_attention(x2, w1a, w2a, w1m, w2m, s_tile=128)
    jax.block_until_ready(out2)
    ref2 = _reference(x2, w1a, w2a, w1m, w2m)
    assert jnp.allclose(out2, ref2, atol=2e-5, rtol=1e-5)

    # Case 3: default (large) spatial tile, single grid step along S.
    out3 = channel_attention(x1, w1a, w2a, w1m, w2m)
    jax.block_until_ready(out3)
    assert jnp.allclose(out3, ref1, atol=2e-5, rtol=1e-5)

    print("KERNEL_OK")
</pallas_src>

<mosaic_0001>
module attributes {stable_mosaic.version = 11 : i64} {
  func.func @channel_attention_kernel(%arg0: i32, %arg1: i32, %arg2: memref<2x32x128xf32, #tpu.memory_space<vmem>>, %arg3: memref<64x4xf32, #tpu.memory_space<vmem>>, %arg4: memref<4x32xf32, #tpu.memory_space<vmem>>, %arg5: memref<2x32xf32, #tpu.memory_space<vmem>>, %arg6: memref<2x32x128xf32, #tpu.memory_space<vmem>>, %arg7: memref<2x32x128xf32, #tpu.memory_space<vmem>>) attributes {dimension_semantics = [#tpu.dimension_semantics<parallel>, #tpu.dimension_semantics<arbitrary>], iteration_bounds = array<i64: 1, 2>, scalar_prefetch = 0 : i64, scratch_operands = 2 : i64, tpu.core_type = #tpu.core_type<tc>, window_params = [{transform_indices = @transform_0, window_bounds = array<i64: 2, 32, 128>}, {pipeline_mode = #tpu.pipeline_mode<synchronous>, transform_indices = @transform_1, window_bounds = array<i64: 64, 4>}, {pipeline_mode = #tpu.pipeline_mode<synchronous>, transform_indices = @transform_2, window_bounds = array<i64: 4, 32>}, {transform_indices = @transform_3, window_bounds = array<i64: 2, 32>}]} {
    %c0_i32 = arith.constant 0 : i32
    %0 = arith.cmpi eq, %arg1, %c0_i32 : i32
    %1 = arith.extui %0 : i1 to i32
    %c0_i32_0 = arith.constant 0 : i32
    %2 = arith.cmpi ne, %1, %c0_i32_0 : i32
    scf.if %2 {
      %cst = arith.constant 0.000000e+00 : f32
      %13 = vector.broadcast %cst : f32 to vector<2x32x128xf32>
      %c0_16 = arith.constant 0 : index
      %c0_17 = arith.constant 0 : index
      %c0_18 = arith.constant 0 : index
      %14 = vector.load %arg6[%c0_16, %c0_17, %c0_18] : memref<2x32x128xf32, #tpu.memory_space<vmem>>, vector<2x32x128xf32>
      tpu.vector_store %arg6[%c0_16, %c0_17, %c0_18], %13 {strides = array<i32>} : memref<2x32x128xf32, #tpu.memory_space<vmem>>, vector<2x32x128xf32>,
      %cst_19 = arith.constant 0xFF800000 : f32
      %15 = vector.broadcast %cst_19 : f32 to vector<2x32x128xf32>
      %c0_20 = arith.constant 0 : index
      %c0_21 = arith.constant 0 : index
      %c0_22 = arith.constant 0 : index
      %16 = vector.load %arg7[%c0_20, %c0_21, %c0_22] : memref<2x32x128xf32, #tpu.memory_space<vmem>>, vector<2x32x128xf32>
      tpu.vector_store %arg7[%c0_20, %c0_21, %c0_22], %15 {strides = array<i32>} : memref<2x32x128xf32, #tpu.memory_space<vmem>>, vector<2x32x128xf32>,
    } else {
    }
    %c0 = arith.constant 0 : index
    %c0_1 = arith.constant 0 : index
    %c0_2 = arith.constant 0 : index
    %3 = vector.load %arg2[%c0, %c0_1, %c0_2] : memref<2x32x128xf32, #tpu.memory_space<vmem>>, vector<2x32x128xf32>
    %c0_3 = arith.constant 0 : index
    %c0_4 = arith.constant 0 : index
    %c0_5 = arith.constant 0 : index
    %4 = vector.load %arg6[%c0_3, %c0_4, %c0_5] : memref<2x32x128xf32, #tpu.memory_space<vmem>>, vector<2x32x128xf32>
    %5 = arith.addf %4, %3 : vector<2x32x128xf32>
    %c0_6 = arith.constant 0 : index
    %c0_7 = arith.constant 0 : index
    %c0_8 = arith.constant 0 : index
    %6 = vector.load %arg6[%c0_6, %c0_7, %c0_8] : memref<2x32x128xf32, #tpu.memory_space<vmem>>, vector<2x32x128xf32>
    tpu.vector_store %arg6[%c0_6, %c0_7, %c0_8], %5 {strides = array<i32>} : memref<2x32x128xf32, #tpu.memory_space<vmem>>, vector<2x32x128xf32>,
    %c0_9 = arith.constant 0 : index
    %c0_10 = arith.constant 0 : index
    %c0_11 = arith.constant 0 : index
    %7 = vector.load %arg7[%c0_9, %c0_10, %c0_11] : memref<2x32x128xf32, #tpu.memory_space<vmem>>, vector<2x32x128xf32>
    %8 = arith.maximumf %7, %3 : vector<2x32x128xf32>
    %c0_12 = arith.constant 0 : index
    %c0_13 = arith.constant 0 : index
    %c0_14 = arith.constant 0 : index
    %9 = vector.load %arg7[%c0_12, %c0_13, %c0_14] : memref<2x32x128xf32, #tpu.memory_space<vmem>>, vector<2x32x128xf32>
    tpu.vector_store %arg7[%c0_12, %c0_13, %c0_14], %8 {strides = array<i32>} : memref<2x32x128xf32, #tpu.memory_space<vmem>>, vector<2x32x128xf32>,
    %c1_i32 = arith.constant 1 : i32
    %10 = arith.cmpi eq, %arg1, %c1_i32 : i32
    %11 = arith.extui %10 : i1 to i32
    %c0_i32_15 = arith.constant 0 : i32
    %12 = arith.cmpi ne, %11, %c0_i32_15 : i32
    scf.if %12 {
      %c0_16 = arith.constant 0 : index
      %c0_17 = arith.constant 0 : index
      %c0_18 = arith.constant 0 : index
      %13 = vector.load %arg6[%c0_16, %c0_17, %c0_18] : memref<2x32x128xf32, #tpu.memory_space<vmem>>, vector<2x32x128xf32>
      %cst = arith.constant dense<0.000000e+00> : vector<2x32xf32>
      %14 = vector.multi_reduction <add>, %13, %cst [2] : vector<2x32x128xf32> to vector<2x32xf32>
      %cst_19 = arith.constant 3.906250e-03 : f32
      %15 = vector.broadcast %cst_19 : f32 to vector<2x32xf32>
      %16 = arith.mulf %14, %15 : vector<2x32xf32>
      %c0_20 = arith.constant 0 : index
      %c0_21 = arith.constant 0 : index
      %c0_22 = arith.constant 0 : index
      %17 = vector.load %arg7[%c0_20, %c0_21, %c0_22] : memref<2x32x128xf32, #tpu.memory_space<vmem>>, vector<2x32x128xf32>
      %cst_23 = arith.constant dense<0xFF800000> : vector<2x32xf32>
      %18 = vector.multi_reduction <maximumf>, %17, %cst_23 [2] : vector<2x32x128xf32> to vector<2x32xf32>
      %19 = tpu.concatenate %16, %18 in 1 : vector<2x32xf32>, vector<2x32xf32> -> vector<2x64xf32>
      %c0_24 = arith.constant 0 : index
      %c0_25 = arith.constant 0 : index
      %20 = vector.load %arg3[%c0_24, %c0_25] : memref<64x4xf32, #tpu.memory_space<vmem>>, vector<64x4xf32>
      %cst_26 = arith.constant dense<0.000000e+00> : vector<2x4xf32>
      %21 = tpu.matmul %19, %20, %cst_26 {dimension_numbers = #tpu.dot_dimension_numbers<[1], [0], [0], [1], [0, 0, 1, 1], [], []>} : vector<2x64xf32>, vector<64x4xf32>, vector<2x4xf32> -> vector<2x4xf32>
      %cst_27 = arith.constant 0.000000e+00 : f32
      %22 = vector.broadcast %cst_27 : f32 to vector<2x4xf32>
      %23 = arith.maximumf %21, %22 : vector<2x4xf32>
      %c0_28 = arith.constant 0 : index
      %c0_29 = arith.constant 0 : index
      %24 = vector.load %arg4[%c0_28, %c0_29] : memref<4x32xf32, #tpu.memory_space<vmem>>, vector<4x32xf32>
      %cst_30 = arith.constant dense<0.000000e+00> : vector<2x32xf32>
      %25 = tpu.matmul %23, %24, %cst_30 {dimension_numbers = #tpu.dot_dimension_numbers<[1], [0], [0], [1], [0, 0, 1, 1], [], []>} : vector<2x4xf32>, vector<4x32xf32>, vector<2x32xf32> -> vector<2x32xf32>
      %26 = arith.negf %25 : vector<2x32xf32>
      %27 = math.exp %26 : vector<2x32xf32>
      %cst_31 = arith.constant 1.000000e+00 : f32
      %28 = vector.broadcast %cst_31 : f32 to vector<2x32xf32>
      %29 = arith.addf %28, %27 : vector<2x32xf32>
      %30 = arith.divf %28, %29 : vector<2x32xf32>
      %c0_32 = arith.constant 0 : index
      %c0_33 = arith.constant 0 : index
      %31 = vector.load %arg5[%c0_32, %c0_33] : memref<2x32xf32, #tpu.memory_space<vmem>>, vector<2x32xf32>
      tpu.vector_store %arg5[%c0_32, %c0_33], %30 {strides = array<i32>} : memref<2x32xf32, #tpu.memory_space<vmem>>, vector<2x32xf32>,
    } else {
    }
    return
  }
  func.func @transform_0(%arg0: i32, %arg1: i32) -> (i32, i32, i32) {
    %c0_i32 = arith.constant 0 : i32
    %c0_i32_0 = arith.constant 0 : i32
    return %arg0, %c0_i32, %arg1 : i32, i32, i32
  }
  func.func @transform_1(%arg0: i32, %arg1: i32) -> (i32, i32) {
    %c0_i32 = arith.constant 0 : i32
    %c0_i32_0 = arith.constant 0 : i32
    %c0_i32_1 = arith.constant 0 : i32
    return %c0_i32, %c0_i32_0 : i32, i32
  }
  func.func @transform_2(%arg0: i32, %arg1: i32) -> (i32, i32) {
    %c0_i32 = arith.constant 0 : i32
    %c0_i32_0 = arith.constant 0 : i32
    %c0_i32_1 = arith.constant 0 : i32
    return %c0_i32, %c0_i32_0 : i32, i32
  }
  func.func @transform_3(%arg0: i32, %arg1: i32) -> (i32, i32) {
    %c0_i32 = arith.constant 0 : i32
    %c0_i32_0 = arith.constant 0 : i32
    return %arg0, %c0_i32 : i32, i32
  }
}

</mosaic_0001>

<bundles_post_ra>
// kernel: tpu_custom_call.1
= control target key start
LH: loop header
LB: loop body
LE: loop exit
PB: predicated region body
PF: predicated region fallthrough
CT: control target
= control target key end

     0   :  { %8 = vsyncpa [#allocation5], 0  ;;  %s925_s0 = inlined_call_operand.hbm [shape: f32[2,32,256], index: 0, kind: input, shape index: {}]   ;;  %s926_s1 = inlined_call_operand.vmem [shape: f32[64,4], index: 1, kind: input, shape index: {}]   ;;  %s927_s2 = inlined_call_operand.vmem [shape: f32[4,32], index: 2, kind: input, shape index: {}]   ;;  %s928_s3 = inlined_call_operand.hbm [shape: f32[2,32], index: 3, kind: output, shape index: {}]  }
   0x1   :  { %10 = vsyncpa [#allocation5 + $0x1], 0 }
   0x2   :  { %11 = vsyncpa [#allocation6], 0  ;;  %s788_s12 = smov 0   ;;  %s790_s13 = smov 0  }
   0x3   :  { %s792_s14 = smov 0   ;;  %s794_s15 = smov 0  }
   0x4   :  { %s796_s16 = smov 0   ;;  %s798_s17 = smov 0  }
   0x5 LB: > { %s560_s18 = sadd.s32 4294967295, %s760_s17   ;;  %s26_s19 = sadd.s32 1, %s756_s16  ;;  %s760_s17 = sphi %s798_s17, %s17_s17   ;;  %s756_s16 = sphi %s796_s16, %s935_s16   ;;  %s752_s15 = sphi %s794_s15, %s934_s15   ;;  %s748_s14 = sphi %s792_s14, %s933_s14   ;;  %s744_s13 = sphi %s790_s13, %s932_s13   ;;  %s740_s12 = sphi %s788_s12, %s931_s12  }
   0x6   : > { %p27_p0 = scmp.ge.s32.totalorder %s26_s19, 2  ;;  %s38_s20 = sadd.s32 1, %s748_s14 }
   0x7   : > { %p45_p1 = scmp.ne.s32.totalorder %s748_s14, %s744_s13  ;;  %p46_p2 = scmp.eq.s32.totalorder %s760_s17, 0 }
   0x8   : > { %s937_s19 = smov (%p27_p0, %s26_s19), 0  ;;  %p51_p4 = scmp.ne.s32.totalorder %s744_s13, %s740_s12 }
   0x9   : > { %p824_p3 = por %p46_p2, %p45_p1  ;;  %s34_s22 = ssub.s32 %s756_s16, %s937_s19 }
   0xa   : > { %p52_p5 = scmp.eq.s32.totalorder %s560_s18, 0  ;;  %p36_p6 = scmp.eq.s32.totalorder %s34_s22, 0 }
   0xb   : > { %p587_p8 = scmp.lt.s32.totalorder %s760_s17, 2  ;;  %s149_s25 = sand.u32 1, %s748_s14  }
   0xc   : > { %p833_p7 = por %p52_p5, %p51_p4  ;;  %s564_s26 = sshll.u32 %s756_s16, 3 }
   0xd   : > { %s839_s24 = scalar_select %p36_p6, %s748_s14, %s38_s20  }
   0xe   : > { %s563_s27 = sshll.u32 %s149_s25, 6  ;;  %s160_s30 = scalar_lea.hbm %s925_s0, %s564_s26 }
   0xf   : > { %s161_s4 = sshll.u32 %s160_s30, 4  ;;  %s153_s5 = scalar_lea.vmem [#allocation4], %s563_s27  ;;  %s162_s4 = int_to_ptr.hbm [resolvable:$true] %s161_s4 }
  0x10   : > { %s163_s6 = sshll.u32 %s153_s5, 4  ;;  %p584_p9 = pnand %p587_p8, %p824_p3  ;;  %s164_s6 = int_to_ptr.vmem [resolvable:$true] %s163_s6 }
  0x11   : > { %p565_p10 = scmp.ge.s32.totalorder %s760_s17, 1  ;;  %s150_s7 = scalar_lea.sflag [#allocation5], %s149_s25 }
  0x12   : > { %s762_s8 = smov 256   ;;  %s763_s9 = smov 128  }
  0x13   : > { %s764_s10 = smov 8   ;;  %p171_p11 = scmp.lt.s32.totalorder %s760_s17, 3 }
  0x14   : > { %586 = dma.hbm_to_vmem [thread:$0]  (!%p584_p9), %s162_s4, 1024, %s164_s6, %s150_s7, %s762_s8, %s763_s9, %s764_s10  }
  0x15   : > { %p172_p12 = pnand %p565_p10, %p171_p11 }
  0x16   : > { %s177_s11 = sand.u32 (!%p172_p12), 1, %s744_s13  }
  0x17   : > { %175 = sbr.rel (%p172_p12) target bundleno = 523 (0x20b), region = 32  ;;  %s566_s12 = sshll.u32 (!%p172_p12), %s177_s11, 6 }
  0x18   : > { %s178_s20 = scalar_lea.sflag (!%p172_p12), [#allocation5], %s177_s11  ;;  %s851_s22 = scalar_lea.vmem (!%p172_p12), [#allocation4], %s566_s12 }
  0x1c   : > { %731 = dma.done.wait (%p833_p7), %s178_s20, 1024  }
  0x1d   : > { %733 = vsyncadd (%p833_p7), %s178_s20, 4294966272  ;;  %p567_p13 = scmp.ne.s32.totalorder %s752_s15, 0 }
  0x1f   : > { %204 = sbr.rel (%p567_p13) target bundleno = 53 (0x35), region = 40 }
  0x24   : > { %v765_v0 = vmov 0.0   ;;  %v766_v1 = vmov -inf  }
  0x25   : > { %205 = vst [vmem:[#allocation2 + $0x30] sm:$0xff] %v765_v0 }
  0x26   : > { %206 = vst [vmem:[#allocation2] sm:$0xff] %v765_v0 }
  0x27   : > { %207 = vst [vmem:[#allocation2 + $0x18] sm:$0xff] %v765_v0 }
  0x28   : > { %208 = vst [vmem:[#allocation2 + $0x10] sm:$0xff] %v765_v0 }
  0x29   : > { %209 = vst [vmem:[#allocation2 + $0x8] sm:$0xff] %v765_v0 }
  0x2a   : > { %210 = vst [vmem:[#allocation2 + $0x20] sm:$0xff] %v765_v0 }
  0x2b   : > { %211 = vst [vmem:[#allocation2 + $0x28] sm:$0xff] %v765_v0 }
  0x2c   : > { %212 = vst [vmem:[#allocation2 + $0x38] sm:$0xff] %v765_v0 }
  0x2d   : > { %213 = vst [vmem:[#allocation3] sm:$0xff] %v766_v1 }
  0x2e   : > { %214 = vst [vmem:[#allocation3 + $0x18] sm:$0xff] %v766_v1 }
  0x2f   : > { %215 = vst [vmem:[#allocation3 + $0x10] sm:$0xff] %v766_v1 }
  0x30   : > { %216 = vst [vmem:[#allocation3 + $0x20] sm:$0xff] %v766_v1 }
  0x31   : > { %217 = vst [vmem:[#allocation3 + $0x28] sm:$0xff] %v766_v1 }
  0x32   : > { %218 = vst [vmem:[#allocation3 + $0x8] sm:$0xff] %v766_v1 }
  0x33   : > { %219 = vst [vmem:[#allocation3 + $0x30] sm:$0xff] %v766_v1 }
  0x34   : > { %220 = vst [vmem:[#allocation3 + $0x38] sm:$0xff] %v766_v1 }
  0x35 PF: > { %v221_v2 = vld [vmem:[%s851_s22] sm:$0xff]  ;;  %v229_v3 = vld [vmem:[#allocation2 + $0x30] sm:$0xff]  ;;  %v222_v4 = vld [vmem:[%s851_s22 + $0x8] sm:$0xff]  ;;  %p568_p0 = scmp.ne.s32.totalorder %s752_s15, 1 }
  0x36   : > { %v237_v5 = vadd.f32 %v229_v3, %v221_v2  ;;  %v230_v6 = vld [vmem:[#allocation2] sm:$0xff]  ;;  %v223_v7 = vld [vmem:[%s851_s22 + $0x10] sm:$0xff]  ;;  %v231_v8 = vld [vmem:[#allocation2 + $0x18] sm:$0xff] }
  0x37   : > { %v238_v9 = vadd.f32 %v230_v6, %v222_v4  ;;  %v239_v10 = vadd.f32 %v231_v8, %v223_v7  ;;  %v224_v11 = vld [vmem:[%s851_s22 + $0x18] sm:$0xff]  ;;  %v232_v12 = vld [vmem:[#allocation2 + $0x10] sm:$0xff]  ;;  %v225_v13 = vld [vmem:[%s851_s22 + $0x20] sm:$0xff] }
  0x38   : > { %245 = vst [vmem:[#allocation2 + $0x30] sm:$0xff] %v237_v5  ;;  %v240_v14 = vadd.f32 %v232_v12, %v224_v11  ;;  %v233_v15 = vld [vmem:[#allocation2 + $0x8] sm:$0xff]  ;;  %v234_v17 = vld [vmem:[#allocation2 + $0x20] sm:$0xff]  ;;  %v227_v20 = vld [vmem:[%s851_s22 + $0x30] sm:$0xff] }
  0x39   : > { %v226_v16 = vld [vmem:[%s851_s22 + $0x28] sm:$0xff]  ;;  %246 = vst [vmem:[#allocation2] sm:$0xff] %v238_v9  ;;  %v241_v18 = vadd.f32 %v233_v15, %v225_v13  ;;  %v228_v22 = vld [vmem:[%s851_s22 + $0x38] sm:$0xff]  ;;  %v253_v25 = vld [vmem:[#allocation3] sm:$0xff] }
  0x3a   : > { %v242_v19 = vadd.f32 %v234_v17, %v226_v16  ;;  %v235_v21 = vld [vmem:[#allocation2 + $0x28] sm:$0xff]  ;;  %247 = vst [vmem:[#allocation2 + $0x18] sm:$0xff] %v239_v10  ;;  %v236_v24 = vld [vmem:[#allocation2 + $0x38] sm:$0xff]  ;;  %v255_v28 = vld [vmem:[#allocation3 + $0x10] sm:$0xff]  ;;  %v261_v29 = vmax.f32 %v253_v25, %v221_v2 }
  0x3b   : > { %v243_v23 = vadd.f32 %v235_v21, %v227_v20  ;;  %v254_v26 = vld [vmem:[#allocation3 + $0x18] sm:$0xff]  ;;  %248 = vst [vmem:[#allocation2 + $0x10] sm:$0xff] %v240_v14  ;;  %v244_v27 = vadd.f32 %v236_v24, %v228_v22  ;;  %v256_v30 = vld [vmem:[#allocation3 + $0x20] sm:$0xff]  ;;  %v257_v32 = vld [vmem:[#allocation3 + $0x28] sm:$0xff]  ;;  %v263_v33 = vmax.f32 %v255_v28, %v223_v7 }
  0x3c   : > { %249 = vst [vmem:[#allocation2 + $0x8] sm:$0xff] %v241_v18  ;;  %v262_v31 = vmax.f32 %v254_v26, %v222_v4  ;;  %v258_v34 = vld [vmem:[#allocation3 + $0x8] sm:$0xff]  ;;  %v264_v35 = vmax.f32 %v256_v30, %v224_v11  ;;  %v259_v36 = vld [vmem:[#allocation3 + $0x30] sm:$0xff]  ;;  %v265_v37 = vmax.f32 %v257_v32, %v225_v13  ;;  %v260_v38 = vld [vmem:[#allocation3 + $0x38] sm:$0xff] }
  0x3d   : > { %250 = vst [vmem:[#allocation2 + $0x20] sm:$0xff] %v242_v19  ;;  %v266_v39 = vmax.f32 %v258_v34, %v226_v16  ;;  %v267_v40 = vmax.f32 %v259_v36, %v227_v20  ;;  %v268_v41 = vmax.f32 %v260_v38, %v228_v22 }
  0x3e   : > { %251 = vst [vmem:[#allocation2 + $0x28] sm:$0xff] %v243_v23 }
  0x3f   : > { %252 = vst [vmem:[#allocation2 + $0x38] sm:$0xff] %v244_v27 }
  0x40   : > { %269 = vst [vmem:[#allocation3] sm:$0xff] %v261_v29 }
  0x41   : > { %270 = vst [vmem:[#allocation3 + $0x18] sm:$0xff] %v262_v31 }
  0x42   : > { %271 = vst [vmem:[#allocation3 + $0x10] sm:$0xff] %v263_v33 }
  0x43   : > { %272 = vst [vmem:[#allocation3 + $0x20] sm:$0xff] %v264_v35  ;;  %280 = sbr.rel (%p568_p0) target bundleno = 517 (0x205), region = 44 }
  0x44   : > { %273 = vst [vmem:[#allocation3 + $0x28] sm:$0xff] %v265_v37 }
  0x45   : > { %274 = vst [vmem:[#allocation3 + $0x8] sm:$0xff] %v266_v39 }
  0x46   : > { %275 = vst [vmem:[#allocation3 + $0x30] sm:$0xff] %v267_v40 }
  0x47   : > { %276 = vst [vmem:[#allocation3 + $0x38] sm:$0xff] %v268_v41 }
  0x48   : > { %v285_v42 = vld [vmem:[#allocation2 + $0x8] sm:$0xff]  ;;  %v281_v43 = vld [vmem:[#allocation2 + $0x30] sm:$0xff]  ;;  %v283_v44 = vld [vmem:[#allocation2 + $0x18] sm:$0xff]  ;;  %v345_v11 = vlaneseq  ;;  %vm350_vm0 = vcmask 130112   ;;  %vm354_vm1 = vcmask 195712   ;;  %vm382_vm2 = vcmask 392512  }
  0x49   : > { %297 = vadd.xlane.f32.xlu1 %v285_v42  ;;  %289 = vadd.xlane.f32.xlu0 %v281_v43  ;;  %v286_v45 = vld [vmem:[#allocation2 + $0x20] sm:$0xff]  ;;  %v287_v47 = vld [vmem:[#allocation2 + $0x28] sm:$0xff]  ;;  %v288_v48 = vld [vmem:[#allocation2 + $0x38] sm:$0xff]  ;;  %vm386_vm3 = vcmask 458112   ;;  %vm358_vm4 = vcmask 261312   ;;  %vm390_vm5 = vcmask 523712  }
  0x4a   : > { %293 = vadd.xlane.f32.xlu2 %v283_v44  ;;  %v282_v46 = vld [vmem:[#allocation2] sm:$0xff]  ;;  %v284_v49 = vld [vmem:[#allocation2 + $0x10] sm:$0xff]  ;;  %v314_v52 = vld [vmem:[#allocation3 + $0x18] sm:$0xff]  ;;  %v346_v15 = vand.u32 127, %v345_v11  ;;  %vm367_vm6 = vcmask 1041409   ;;  %vm401_vm7 = vcmask 261120  }
  0x4b   : > { %v313_v50 = vld [vmem:[#allocation3] sm:$0xff]  ;;  %v317_v51 = vld [vmem:[#allocation3 + $0x28] sm:$0xff]  ;;  %v315_v55 = vld [vmem:[#allocation3 + $0x10] sm:$0xff]  ;;  %vm411_vm8 = vcmask 523264   ;;  %vm441_vm9 = vcmask 1043456   ;;  %vm437_vm10 = vcmask 31744  }
  0x4c   : > { %v318_v53 = vld [vmem:[#allocation3 + $0x8] sm:$0xff]  ;;  %v316_v56 = vld [vmem:[#allocation3 + $0x20] sm:$0xff]  ;;  %v410_v58 = vld [vmem:[%s926_s1 + $0x38] sm:$0xff]  ;;  %v348_v17 = vadd.s32 4294967288, %v346_v15  ;;  %v352_v21 = vadd.s32 4294967280, %v346_v15  ;;  %v356_v22 = vadd.s32 4294967272, %v346_v15 }
  0x4d   : > { %v319_v54 = vld [vmem:[#allocation3 + $0x30] sm:$0xff]  ;;  %423 = vmatpush.msra.mxu0 %v410_v58  ;;  %v408_v63 = vld [vmem:[%s926_s1 + $0x28] sm:$0xff]  ;;  %v407_v0 = vld [vmem:[%s926_s1 + $0x20] sm:$0xff]  ;;  %v378_v23 = vadd.s32 4294967264, %v346_v15  ;;  %v380_v24 = vadd.s32 4294967256, %v346_v15  ;;  %v384_v28 = vadd.s32 4294967248, %v346_v15 }
  0x4e   : > { %v320_v57 = vld [vmem:[#allocation3 + $0x38] sm:$0xff]  ;;  %v409_v61 = vld [vmem:[%s926_s1 + $0x30] sm:$0xff]  ;;  %v404_v6 = vld [vmem:[%s926_s1 + $0x8] sm:$0xff]  ;;  %v388_v35 = vadd.s32 4294967240, %v346_v15  ;;  %vm484_vm14 = vcmask 254976  }
  0x4f   : > { %424 = vmatpush.msra.mxu0 %v409_v61  ;;  %v406_v1 = vld [vmem:[%s926_s1 + $0x18] sm:$0xff]  ;;  %v405_v4 = vld [vmem:[%s926_s1 + $0x10] sm:$0xff]  ;;  %v403_v7 = vld [vmem:[%s926_s1] sm:$0xff] }
  0x51   : > { %299 = vadd.xlane.f32.xlu1 %v286_v45  ;;  %291 = vadd.xlane.f32.xlu0 %v282_v46 }
  0x52   : > { %301 = vadd.xlane.f32.xlu2 %v287_v47  ;;  %425 = vmatpush.msra.mxu0 %v408_v63 }
  0x54   : > { %426 = vmatpush.msra.mxu0 %v407_v0 }
  0x56   : > { %427 = vmatpush.msra.mxu0 %v406_v1 }
  0x58   : > { %428 = vmatpush.msra.mxu0 %v405_v4 }
  0x59   : > { %303 = vadd.xlane.f32.xlu1 %v288_v48  ;;  %295 = vadd.xlane.f32.xlu0 %v284_v49 }
  0x5a   : > { %321 = vmax.xlane.f32.xlu2 %v313_v50  ;;  %429 = vmatpush.msra.mxu0 %v404_v6 }
  0x5c   : > { %430 = vmatpush.msra.mxu0 %v403_v7 }
  0x61   : > { %329 = vmax.xlane.f32.xlu1 %v317_v51  ;;  %323 = vmax.xlane.f32.xlu0 %v314_v52 }
  0x62   : > { %331 = vmax.xlane.f32.xlu2 %v318_v53 }
  0x69   : > { %333 = vmax.xlane.f32.xlu1 %v319_v54  ;;  %325 = vmax.xlane.f32.xlu0 %v315_v55 }
  0x6a   : > { %327 = vmax.xlane.f32.xlu2 %v316_v56 }
  0x71   : > { %335 = vmax.xlane.f32.xlu0 %v320_v57 }
  0xbc   : > { %v298_v59 = vpop.xlane.xlu1 %297  ;;  %v290_v60 = vpop.xlane.xlu0 %289 }
  0xbd   : > { %v294_v62 = vpop.xlane.xlu2 %293  ;;  %v309_v16 = vmul.f32 0.00390625, %v298_v59  ;;  %v305_v20 = vmul.f32 0.00390625, %v290_v60 }
  0xbe   : > { %v307_v26 = vmul.f32 0.00390625, %v294_v62 }
  0xbf   : > { %v360_v25 = vperm.slane %v309_v16, %v346_v15  ;;  %v347_v34 = vperm.slane %v305_v20, %v346_v15 }
  0xc0   : > { %v353_v41 = vperm.slane %v307_v26, %v352_v21 }
  0xc4   : > { %v300_v2 = vpop.xlane.xlu1 %299  ;;  %v292_v3 = vpop.xlane.xlu0 %291 }
  0xc5   : > { %v302_v5 = vpop.xlane.xlu2 %301  ;;  %v310_v18 = vmul.f32 0.00390625, %v300_v2  ;;  %v306_v19 = vmul.f32 0.00390625, %v292_v3  ;;  %v436_v2 = vld [vmem:[%s927_s2] sm:$0xf] }
  0xc6   : > { %v311_v27 = vmul.f32 0.00390625, %v302_v5  ;;  %570 = vmatpush.msk.msra.mxu1 %vm441_vm9, %v436_v2 }
  0xc7   : > { %v361_v30 = vperm.slane %v310_v18, %v348_v17  ;;  %v349_v31 = vperm.slane %v306_v19, %v348_v17 }
  0xc8   : > { %v363_v42 = vperm.slane %v311_v27, %v352_v21 }
  0xc9   : > { %v362_v45 = vsel %vm350_vm0, %v361_v30, %v360_v25  ;;  %v351_v46 = vsel %vm350_vm0, %v349_v31, %v347_v34 }
  0xca   : > { %v364_v53 = vsel %vm354_vm1, %v363_v42, %v362_v45  ;;  %v355_v56 = vsel %vm354_vm1, %v353_v41, %v351_v46 }
  0xcc   : > { %v304_v8 = vpop.xlane.xlu1 %303  ;;  %v296_v9 = vpop.xlane.xlu0 %295 }
  0xcd   : > { %v322_v10 = vpop.xlane.xlu2 %321  ;;  %v312_v32 = vmul.f32 0.00390625, %v304_v8  ;;  %v308_v33 = vmul.f32 0.00390625, %v296_v9 }
  0xce   : > { %v379_v36 = vperm.slane %v322_v10, %v378_v23 }
  0xcf   : > { %v365_v47 = vperm.slane %v312_v32, %v356_v22  ;;  %v357_v48 = vperm.slane %v308_v33, %v356_v22 }
  0xd1   : > { %v359_v58 = vsel %vm358_vm4, %v357_v48, %v355_v56  ;;  %v366_v59 = vsel %vm358_vm4, %v365_v47, %v364_v53 }
  0xd2   : > { %v368_v63 = vsel %vm367_vm6, %v366_v59, %v359_v58 }
  0xd4   : > { %v324_v12 = vpop.xlane.xlu0 %323  ;;  %v330_v13 = vpop.xlane.xlu1 %329 }
  0xd5   : > { %v332_v14 = vpop.xlane.xlu2 %331  ;;  %v392_v37 = vperm.slane %v330_v13, %v378_v23  ;;  %v381_v38 = vperm.slane %v324_v12, %v380_v24 }
  0xd6   : > { %v393_v39 = vperm.slane %v332_v14, %v380_v24 }
  0xd7   : > { %v383_v50 = vsel %vm382_vm2, %v381_v38, %v379_v36 }
  0xd8   : > { %v394_v51 = vsel %vm382_vm2, %v393_v39, %v392_v37 }
  0xdc   : > { %v326_v29 = vpop.xlane.xlu0 %325  ;;  %v334_v40 = vpop.xlane.xlu1 %333 }
  0xdd   : > { %v385_v43 = vperm.slane %v326_v29, %v384_v28  ;;  %v328_v44 = vpop.xlane.xlu2 %327  ;;  %v395_v49 = vperm.slane %v334_v40, %v384_v28 }
  0xde   : > { %v389_v52 = vperm.slane %v328_v44, %v388_v35 }
  0xdf   : > { %v387_v54 = vsel %vm386_vm3, %v385_v43, %v383_v50  ;;  %v396_v60 = vsel %vm386_vm3, %v395_v49, %v394_v51 }
  0xe0   : > { %v391_v61 = vsel %vm390_vm5, %v389_v52, %v387_v54 }
  0xe4   : > { %v336_v55 = vpop.xlane.xlu0 %335 }
  0xe5   : > { %v397_v57 = vperm.slane %v336_v55, %v388_v35 }
  0xe7   : > { %v398_v62 = vsel %vm390_vm5, %v397_v57, %v396_v60 }
  0xe8   : > { %v399_v0 = vsel %vm367_vm6, %v398_v62, %v391_v61 }
  0xe9   : > { %v402_v1 = vsel %vm401_vm7, %v368_v63, %v399_v0 }
  0xea   : > { %569 = vmatmul.msk.f32.vlgmr.msra.gmra.mxu0 %vm411_vm8, %v402_v1 }
 0x167   : > { %v432_v3 = vpop.f32.mrf.mxu0 }
 0x168   : > { %v435_v4 = vmax.f32 %v432_v3, 0.0 }
 0x16a   : > { %571 = vmatmul.msk.f32.vlgmr.msra.gmra.mxu1 %vm437_vm10, %v435_v4 }
 0x1e7   : > { %v462_v5 = vpop.f32.mrf.mxu1 }
 0x1e8   : > { %v572_v6 = vmul.f32 -1.442695, %v462_v5 }
 0x1ea   : > { %644 = vpow2.f32 %v572_v6 }
 0x1f0   : > { %v645_v7 = vpop.eup %644 }
 0x1f1   : > { %v468_v8 = vadd.f32 1.0, %v645_v7 }
 0x1f3   : > { %646 = vrcp.f32 %v468_v8  ;;  %v480_v12 = vand.u32 2147483648, %v468_v8  ;;  %v478_v14 = vand.u32 2147483647, %v468_v8  ;;  %vm474_vm12 = vweird.f32 %v468_v8 }
 0x1f5   : > { %v481_v16 = vor.u32 1.1754944e-38, %v480_v12  ;;  %vm479_vm15 = vcmp.eq.f32.partialorder %v478_v14, 8.507059e+37 }
 0x1f9   : > { %v647_v9 = vpop.eup %646 }
 0x1fa   : > { %v470_v10 = vmul.f32 %v647_v9, %v468_v8  ;;  %vm475_vm11 = vweird.f32 %v647_v9 }
 0x1fb   : > { %vm476_vm13 = vmor %vm474_vm12, %vm475_vm11 }
 0x1fc   : > { %v471_v11 = vsub.f32 1.0, %v470_v10 }
 0x1fe   : > { %v472_v13 = vmul.f32 %v647_v9, %v471_v11 }
 0x200   : > { %v473_v15 = vadd.f32 %v647_v9, %v472_v13 }
 0x202   : > { %v477_v17 = vsel %vm476_vm13, %v647_v9, %v473_v15 }
 0x203   : > { %v482_v18 = vsel %vm479_vm15, %v481_v16, %v477_v17 }
 0x204   : > { %485 = vst.msk [vmem:[#allocation7] sm:$0x3] %vm484_vm14, %v482_v18 }
 0x205 PF: > { %p588_p1 = scmp.eq.s32.totalorder %s560_s18, 1  ;;  %s496_s15 = sshll.u32 %s928_s3, 4  ;;  %s497_s15 = int_to_ptr.hbm [resolvable:$true] %s496_s15 }
 0x206   : > { %s767_s21 = smov [#allocation7]  }
 0x207   : > { %s494_s23 = sshll.u32 %s767_s21, 4  ;;  %s495_s23 = int_to_ptr.vmem [resolvable:$true] %s494_s23 }
 0x208   : > { %580 = dma.vmem_to_hbm [thread:$0]  (%p588_p1), %s495_s23, 32, %s497_s15, [#allocation6]  }
 0x209   : > { %735 = dma.done.wait (%p588_p1), [#allocation6], 32  }
 0x20a   : > { %737 = vsyncadd (%p588_p1), [#allocation6], 4294967264 }
 0x20b PF: > { %s17_s17 = sadd.s32 1, %s760_s17   ;;  %s931_s12 = smov %s744_s13 }
 0x20c   : > { %p14_p2 = scmp.ge.s32.totalorder %s17_s17, 4   ;;  %s932_s13 = smov %s748_s14 }
 0x20d   : > { %s933_s14 = smov %s839_s24  ;;  %s934_s15 = smov %s756_s16 }
 0x20e   : > { %s935_s16 = smov %s937_s19  ;;  %16 = sbr.rel (!%p14_p2) target bundleno = 5 (0x5), region = 78 }
 0x213   :  { %510 = vsyncpa [#allocation5], 1 }
 0x214   :  { %512 = vsyncpa [#allocation5 + $0x1], 1 }
 0x215   :  { %513 = vsyncpa [#allocation6], 1 }
 0x216   :  { %515 = vsyncpa [#allocation6 + $0x1], 1 }

</bundles_post_ra>
